<compile_context>
chip_gen: v7x
topology: tpu7x:2x2x1
jax: 0.10.0
libtpu: 0.0.40
codegen_flags: <defaults>
</compile_context>

<pallas_src>
import functools

import jax
import jax.numpy as jnp
from jax import lax
from jax.experimental import pallas as pl
from jax.experimental.pallas import tpu as pltpu


def _round_up(x, m):
    return ((x + m - 1) // m) * m


# ----------------------------- Pallas kernel --------------------------------
def _sage_conv_kernel(a_ref, ys_ref, r_ref, o_ref, acc_ref, *, apply_relu):
    """One (dst-tile, src-tile) grid step of SAGEConv(aggr='mean', normalize=True).

    Hot loop is the lane-dense (N = hid_p = 128) accumulation
        acc += A_tile @ (x_src @ W_l)_tile
    (associativity: lin_l(mean_j x_j) == mean_j lin_l(x_j)).  The epilogue adds
    the resident residual R = x_dst @ W_r + b, L2-normalizes (rsqrt on the EUP),
    optionally fuses the inter-layer ReLU, and stores once.

      a_ref  : (TM, TK)   bf16  mean-adjacency tile
      ys_ref : (TK, Hp)   bf16  pre-transformed src features (x_src @ W_l)
      r_ref  : (TM, Hp)   f32   residual x_dst @ W_r + b (resident over k)
      o_ref  : (TM, Hp)   bf16/f32 output tile (written once, in epilogue)
      acc_ref: (TM, Hp)   f32   scratch accumulator
    """
    k = pl.program_id(1)

    @pl.when(k == 0)
    def _init():
        acc_ref[...] = jnp.zeros_like(acc_ref)

    acc_ref[...] += jnp.dot(a_ref[...], ys_ref[...],
                            preferred_element_type=jnp.float32)

    @pl.when(k == pl.num_programs(1) - 1)
    def _epilogue():
        out = acc_ref[...] + r_ref[...]
        # normalize=True -> F.normalize(out, p=2, dim=-1); padded lanes stay zero
        # so the 128-lane reduction equals the true 64-lane one.
        sumsq = jnp.sum(out * out, axis=-1, keepdims=True)
        out = out * lax.rsqrt(jnp.maximum(sumsq, 1e-24))
        if apply_relu:
            out = jnp.maximum(out, 0.0)
        o_ref[...] = out.astype(o_ref.dtype)


# ------------------------- adjacency prep (hoisted) --------------------------
def prepare_adj(edge_index, edge_weight, n_src, n_dst, *, tm_max=512, tk_max=4096):
    """Build the mean-aggregation adjacency ONCE per edge type (padded + bf16,
    reused by conv1 and conv2) and pick tile sizes.

    A[i, j] = (sum of edge_weight over edges j->i) / in_degree(i)  (0 rows if deg==0)
    NOTE: matches PyG SAGEConv 'mean' with edge_weight: mean over edge COUNT of
    (edge_weight * x_j).
    """
    src, dst = edge_index[0], edge_index[1]
    A = jnp.zeros((n_dst, n_src), jnp.float32).at[dst, src].add(edge_weight)
    deg = jnp.zeros((n_dst,), jnp.float32).at[dst].add(1.0)
    A = A / jnp.maximum(deg, 1.0)[:, None]

    # Tile sizes: as large as fits comfortably (kernel is DMA-bound on A).
    # Sublane dim aligned to 16 (bf16 packing); lane/reduction dim to 128.
    tm = min(tm_max, _round_up(n_dst, 16))
    # v7x megacore: prefer >= 2 dst tiles so the "parallel" axis uses both TCs.
    if _round_up(n_dst, tm) // tm < 2 and tm >= 32:
        tm = _round_up((tm + 1) // 2, 16)
    tk = min(tk_max, _round_up(n_src, 128))
    n_dst_p = _round_up(n_dst, tm)
    n_src_p = _round_up(n_src, tk)

    A_p = jnp.zeros((n_dst_p, n_src_p), jnp.bfloat16)
    A_p = A_p.at[:n_dst, :n_src].set(A.astype(jnp.bfloat16))
    return {"A": A_p, "n_dst": n_dst, "n_src": n_src,
            "tm": tm, "tk": tk, "n_dst_p": n_dst_p, "n_src_p": n_src_p}


# ------------------------------- SAGEConv ------------------------------------
def sage_conv(adj, x_src, x_dst, W_l, W_r, b, hid, *, fuse_relu=False,
              out_dtype=jnp.float32):
    """One SAGEConv(aggr='mean', normalize=True) for one edge type."""
    tm, tk = adj["tm"], adj["tk"]
    n_dst_p, n_src_p = adj["n_dst_p"], adj["n_src_p"]
    hid_p = W_l.shape[1]          # lane-padded hidden width (multiple of 128)

    # Small pre-transforms (XLA, f32; tiny vs the A stream):
    #   Y_src = x_src @ W_l  -> lane-dense kernel operand
    #   R_dst = x_dst @ W_r + b -> resident residual added in the epilogue
    ys = jnp.dot(x_src.astype(jnp.float32), W_l, preferred_element_type=jnp.float32)
    rd = jnp.dot(x_dst.astype(jnp.float32), W_r, preferred_element_type=jnp.float32) + b

    ys_p = jnp.zeros((n_src_p, hid_p), jnp.bfloat16)
    ys_p = ys_p.at[:adj["n_src"]].set(ys.astype(jnp.bfloat16))
    rd_p = jnp.zeros((n_dst_p, hid_p), jnp.float32)
    rd_p = rd_p.at[:adj["n_dst"]].set(rd)

    grid = (n_dst_p // tm, n_src_p // tk)

    out = pl.pallas_call(
        functools.partial(_sage_conv_kernel, apply_relu=fuse_relu),
        out_shape=jax.ShapeDtypeStruct((n_dst_p, hid_p), out_dtype),
        grid_spec=pltpu.PrefetchScalarGridSpec(
            num_scalar_prefetch=0,
            grid=grid,
            in_specs=[
                pl.BlockSpec((tm, tk), lambda i, k: (i, k)),       # A tile
                pl.BlockSpec((tk, hid_p), lambda i, k: (k, 0)),    # x_src @ W_l tile
                pl.BlockSpec((tm, hid_p), lambda i, k: (i, 0)),    # residual (resident over k)
            ],
            out_specs=pl.BlockSpec((tm, hid_p), lambda i, k: (i, 0)),
            scratch_shapes=[
                pltpu.VMEM((tm, hid_p), jnp.float32),              # f32 accumulator
            ],
        ),
        compiler_params=pltpu.CompilerParams(
            dimension_semantics=("parallel", "arbitrary"),
            # ~11 MiB needed at tm=512 / tk=4096 with double buffering; 40 MiB
            # gives headroom while staying inside v7x's 64 MiB physical VMEM.
            vmem_limit_bytes=40 * 1024 * 1024,
        ),
    )(adj["A"], ys_p, rd_p)

    return out[:adj["n_dst"], :hid]


# ------------------------------ glue (JAX) -----------------------------------
def hetero_conv(x_dict, adj_dict, conv_params, metadata, hid, *, relu=False,
                out_dtype=jnp.float32):
    """HeteroConv(..., aggr='sum'): run SAGEConv per edge type, sum per dst type."""
    node_types, edge_types = metadata
    n_in = {nt: sum(1 for et in edge_types if et[2] == nt) for nt in node_types}
    out = {nt: None for nt in node_types}
    for et in edge_types:
        src_t, _, dst_t = et
        p = conv_params[et]
        # ReLU may be fused into the kernel only when this dst type has a single
        # contributing edge type (otherwise ReLU must follow the HeteroConv sum).
        fuse = relu and n_in[dst_t] == 1
        y = sage_conv(adj_dict[et], x_dict[src_t], x_dict[dst_t],
                      p["W_l"], p["W_r"], p["b"], hid,
                      fuse_relu=fuse, out_dtype=out_dtype)
        out[dst_t] = y if out[dst_t] is None else out[dst_t] + y
    res = {}
    for nt, v in out.items():
        if v is None:
            continue
        if relu and n_in[nt] > 1:
            v = jax.nn.relu(v)
        res[nt] = v
    return res


def init_params(key, metadata, n_nodes, emb_dim=64, hid_dim=64):
    node_types, edge_types = metadata
    params = {"emb": {}, "conv1": {}, "conv2": {}, "hid_dim": hid_dim}
    for nt in node_types:
        key, k = jax.random.split(key)
        params["emb"][nt] = jax.random.normal(k, (n_nodes[nt], emb_dim), jnp.float32)

    hid_p = _round_up(hid_dim, 128)   # lane-dense output width

    def lin(key, fan_in, fan_out, bias):
        bound = 1.0 / float(fan_in) ** 0.5
        key, kw = jax.random.split(key)
        W = jax.random.uniform(kw, (fan_in, fan_out), jnp.float32, -bound, bound)
        b = None
        if bias:
            key, kb = jax.random.split(key)
            b = jax.random.uniform(kb, (1, fan_out), jnp.float32, -bound, bound)
        return key, W, b

    for layer, in_dim in (("conv1", emb_dim), ("conv2", hid_dim)):
        for et in edge_types:
            key, W_l, b_l = lin(key, in_dim, hid_dim, bias=True)   # lin_l (bias)
            key, W_r, _ = lin(key, in_dim, hid_dim, bias=False)    # lin_r (root, no bias)
            # Lane-pad hid -> 128 (zero columns): kernel tiles stay lane-dense and
            # the L2 normalization is unaffected (padded columns are always 0).
            params[layer][et] = {
                "W_l": jnp.zeros((in_dim, hid_p), jnp.float32).at[:, :hid_dim].set(W_l),
                "W_r": jnp.zeros((in_dim, hid_p), jnp.float32).at[:, :hid_dim].set(W_r),
                "b":   jnp.zeros((1, hid_p), jnp.float32).at[:, :hid_dim].set(b_l),
            }
    # TODO(synk): dec_exist / dec_weight MLPs exist in __init__ but are not used
    # in forward(), so they are not instantiated here.
    return params


def hetero_graphsage_forward(params, batch, metadata, n_nodes):
    """Matches HeteroGraphSAGE.forward: embed n_id -> conv1 -> ReLU -> conv2."""
    node_types, edge_types = metadata
    hid = params["hid_dim"]
    # Embedding lookup of sampled node ids.
    x = {nt: jnp.take(params["emb"][nt], batch["n_id"][nt], axis=0)
         for nt in node_types}
    # Dense mean-aggregation adjacencies: built / padded / bf16-cast ONCE per edge
    # type and reused by both conv layers (A is the dominant HBM stream).
    adj = {et: prepare_adj(batch["edge_index"][et], batch["edge_weight"][et],
                           n_src=batch["n_id"][et[0]].shape[0],
                           n_dst=batch["n_id"][et[2]].shape[0])
           for et in edge_types}
    # conv1: bf16 output with the inter-layer ReLU fused into the kernel epilogue.
    h = hetero_conv(x, adj, params["conv1"], metadata, hid,
                    relu=True, out_dtype=jnp.bfloat16)
    # conv2: final result in f32.
    h = hetero_conv(h, adj, params["conv2"], metadata, hid,
                    relu=False, out_dtype=jnp.float32)
    return h


# --------------------------- pure-JAX reference -------------------------------
def _reference_forward(params, batch, metadata, n_nodes):
    node_types, edge_types = metadata
    hid = params["hid_dim"]

    def mean_adj(et):
        src, dst = batch["edge_index"][et]
        n_src = batch["n_id"][et[0]].shape[0]
        n_dst = batch["n_id"][et[2]].shape[0]
        A = jnp.zeros((n_dst, n_src), jnp.float32).at[dst, src].add(
            batch["edge_weight"][et])
        deg = jnp.zeros((n_dst,), jnp.float32).at[dst].add(1.0)
        return A / jnp.maximum(deg, 1.0)[:, None]

    adj = {et: mean_adj(et) for et in edge_types}

    def conv(x, layer, relu):
        out = {}
        for et in edge_types:
            src_t, _, dst_t = et
            p = params[layer][et]
            agg = adj[et] @ x[src_t]
            y = (agg @ p["W_l"][:, :hid] + x[dst_t] @ p["W_r"][:, :hid]
                 + p["b"][:, :hid])
            y = y / jnp.maximum(jnp.linalg.norm(y, axis=-1, keepdims=True), 1e-12)
            out[dst_t] = out.get(dst_t, 0.0) + y
        if relu:
            out = {k: jax.nn.relu(v) for k, v in out.items()}
        return out

    x = {nt: jnp.take(params["emb"][nt], batch["n_id"][nt], axis=0)
         for nt in node_types}
    h = conv(x, "conv1", relu=True)
    return conv(h, "conv2", relu=False)


# ---------------------------------- main -------------------------------------
if __name__ == "__main__":
    key = jax.random.PRNGKey(0)

    node_types = ["app", "api"]
    edge_types = [("app", "calls", "api"), ("api", "rev_calls", "app")]
    metadata = (node_types, edge_types)
    n_nodes = {"app": 16, "api": 24}
    emb_dim = hid_dim = 64
    n_edges = 40

    key, kp = jax.random.split(key)
    params = init_params(kp, metadata, n_nodes, emb_dim, hid_dim)

    # Synthetic mini-batch: full node sets + random edges with weights.
    batch = {"n_id": {"app": jnp.arange(n_nodes["app"], dtype=jnp.int32),
                      "api": jnp.arange(n_nodes["api"], dtype=jnp.int32)},
             "edge_index": {}, "edge_weight": {}}
    for et in edge_types:
        src_t, _, dst_t = et
        key, ks, kd, kw = jax.random.split(key, 4)
        src = jax.random.randint(ks, (n_edges,), 0, n_nodes[src_t], jnp.int32)
        dst = jax.random.randint(kd, (n_edges,), 0, n_nodes[dst_t], jnp.int32)
        batch["edge_index"][et] = jnp.stack([src, dst], axis=0)
        batch["edge_weight"][et] = jax.random.uniform(kw, (n_edges,), jnp.float32)

    h = hetero_graphsage_forward(params, batch, metadata, n_nodes)
    h = {k: jax.block_until_ready(v) for k, v in h.items()}

    assert h["app"].shape == (n_nodes["app"], hid_dim)
    assert h["api"].shape == (n_nodes["api"], hid_dim)
    assert all(bool(jnp.all(jnp.isfinite(v))) for v in h.values())

    # Correctness vs pure-JAX f32 reference (kernel feeds A / x@W_l through bf16).
    ref = _reference_forward(params, batch, metadata, n_nodes)
    for nt in node_types:
        err = float(jnp.max(jnp.abs(h[nt] - ref[nt])))
        assert err < 5e-2, f"{nt}: max abs err {err}"

    print("KERNEL_OK")
</pallas_src>

<mosaic_0001>
module attributes {stable_mosaic.version = 11 : i64} {
  func.func @_sage_conv_kernel(%arg0: i32, %arg1: i32, %arg2: memref<16x128xbf16, #tpu.memory_space<vmem>>, %arg3: memref<128x128xbf16, #tpu.memory_space<vmem>>, %arg4: memref<16x128xf32, #tpu.memory_space<vmem>>, %arg5: memref<16x128xbf16, #tpu.memory_space<vmem>>, %arg6: memref<16x128xf32, #tpu.memory_space<vmem>>) attributes {dimension_semantics = [#tpu.dimension_semantics<parallel>, #tpu.dimension_semantics<arbitrary>], iteration_bounds = array<i64: 2, 1>, scalar_prefetch = 0 : i64, scratch_operands = 1 : i64, tpu.core_type = #tpu.core_type<tc>, window_params = [{transform_indices = @transform_0, window_bounds = array<i64: 16, 128>}, {transform_indices = @transform_1, window_bounds = array<i64: 128, 128>}, {transform_indices = @transform_2, window_bounds = array<i64: 16, 128>}, {transform_indices = @transform_3, window_bounds = array<i64: 16, 128>}]} {
    %c0_i32 = arith.constant 0 : i32
    %0 = arith.cmpi eq, %arg1, %c0_i32 : i32
    %1 = arith.extui %0 : i1 to i32
    %c0_i32_0 = arith.constant 0 : i32
    %2 = arith.cmpi ne, %1, %c0_i32_0 : i32
    scf.if %2 {
      %cst_10 = arith.constant 0.000000e+00 : f32
      %12 = vector.broadcast %cst_10 : f32 to vector<16x128xf32>
      %c0_11 = arith.constant 0 : index
      %c0_12 = arith.constant 0 : index
      %13 = vector.load %arg6[%c0_11, %c0_12] : memref<16x128xf32, #tpu.memory_space<vmem>>, vector<16x128xf32>
      tpu.vector_store %arg6[%c0_11, %c0_12], %12 {strides = array<i32>} : memref<16x128xf32, #tpu.memory_space<vmem>>, vector<16x128xf32>,
    } else {
    }
    %c0 = arith.constant 0 : index
    %c0_1 = arith.constant 0 : index
    %3 = vector.load %arg6[%c0, %c0_1] : memref<16x128xf32, #tpu.memory_space<vmem>>, vector<16x128xf32>
    %c0_2 = arith.constant 0 : index
    %c0_3 = arith.constant 0 : index
    %4 = vector.load %arg2[%c0_2, %c0_3] : memref<16x128xbf16, #tpu.memory_space<vmem>>, vector<16x128xbf16>
    %c0_4 = arith.constant 0 : index
    %c0_5 = arith.constant 0 : index
    %5 = vector.load %arg3[%c0_4, %c0_5] : memref<128x128xbf16, #tpu.memory_space<vmem>>, vector<128x128xbf16>
    %cst = arith.constant dense<0.000000e+00> : vector<16x128xf32>
    %6 = tpu.matmul %4, %5, %cst {dimension_numbers = #tpu.dot_dimension_numbers<[1], [0], [0], [1], [0, 0, 1, 1], [], []>} : vector<16x128xbf16>, vector<128x128xbf16>, vector<16x128xf32> -> vector<16x128xf32>
    %7 = arith.addf %3, %6 : vector<16x128xf32>
    %c0_6 = arith.constant 0 : index
    %c0_7 = arith.constant 0 : index
    %8 = vector.load %arg6[%c0_6, %c0_7] : memref<16x128xf32, #tpu.memory_space<vmem>>, vector<16x128xf32>
    tpu.vector_store %arg6[%c0_6, %c0_7], %7 {strides = array<i32>} : memref<16x128xf32, #tpu.memory_space<vmem>>, vector<16x128xf32>,
    %c0_i32_8 = arith.constant 0 : i32
    %9 = arith.cmpi eq, %arg1, %c0_i32_8 : i32
    %10 = arith.extui %9 : i1 to i32
    %c0_i32_9 = arith.constant 0 : i32
    %11 = arith.cmpi ne, %10, %c0_i32_9 : i32
    scf.if %11 {
      %c0_10 = arith.constant 0 : index
      %c0_11 = arith.constant 0 : index
      %12 = vector.load %arg6[%c0_10, %c0_11] : memref<16x128xf32, #tpu.memory_space<vmem>>, vector<16x128xf32>
      %c0_12 = arith.constant 0 : index
      %c0_13 = arith.constant 0 : index
      %13 = vector.load %arg4[%c0_12, %c0_13] : memref<16x128xf32, #tpu.memory_space<vmem>>, vector<16x128xf32>
      %14 = arith.addf %12, %13 : vector<16x128xf32>
      %15 = arith.mulf %14, %14 : vector<16x128xf32>
      %cst_14 = arith.constant dense<0.000000e+00> : vector<16xf32>
      %16 = vector.multi_reduction <add>, %15, %cst_14 [1] : vector<16x128xf32> to vector<16xf32>
      %17 = vector.shape_cast %16 : vector<16xf32> to vector<16x1xf32>
      %cst_15 = arith.constant 1.000000e-24 : f32
      %18 = vector.broadcast %cst_15 : f32 to vector<16x1xf32>
      %19 = arith.maximumf %17, %18 : vector<16x1xf32>
      %20 = math.rsqrt %19 : vector<16x1xf32>
      %21 = vector.broadcast %20 : vector<16x1xf32> to vector<16x128xf32>
      %22 = arith.mulf %14, %21 : vector<16x128xf32>
      %cst_16 = arith.constant 0.000000e+00 : f32
      %23 = vector.broadcast %cst_16 : f32 to vector<16x128xf32>
      %24 = arith.maximumf %22, %23 : vector<16x128xf32>
      %25 = arith.truncf %24 : vector<16x128xf32> to vector<16x128xbf16>
      %c0_17 = arith.constant 0 : index
      %c0_18 = arith.constant 0 : index
      %26 = vector.load %arg5[%c0_17, %c0_18] : memref<16x128xbf16, #tpu.memory_space<vmem>>, vector<16x128xbf16>
      tpu.vector_store %arg5[%c0_17, %c0_18], %25 {strides = array<i32>} : memref<16x128xbf16, #tpu.memory_space<vmem>>, vector<16x128xbf16>,
    } else {
    }
    return
  }
  func.func @transform_0(%arg0: i32, %arg1: i32) -> (i32, i32) {
    %c0_i32 = arith.constant 0 : i32
    return %arg0, %arg1 : i32, i32
  }
  func.func @transform_1(%arg0: i32, %arg1: i32) -> (i32, i32) {
    %c0_i32 = arith.constant 0 : i32
    %c0_i32_0 = arith.constant 0 : i32
    return %arg1, %c0_i32 : i32, i32
  }
  func.func @transform_2(%arg0: i32, %arg1: i32) -> (i32, i32) {
    %c0_i32 = arith.constant 0 : i32
    %c0_i32_0 = arith.constant 0 : i32
    return %arg0, %c0_i32 : i32, i32
  }
  func.func @transform_3(%arg0: i32, %arg1: i32) -> (i32, i32) {
    %c0_i32 = arith.constant 0 : i32
    %c0_i32_0 = arith.constant 0 : i32
    return %arg0, %c0_i32 : i32, i32
  }
}

</mosaic_0001>

<bundles_post_ra>
// kernel: tpu_custom_call.1
= control target key start
LH: loop header
LB: loop body
LE: loop exit
PB: predicated region body
PF: predicated region fallthrough
CT: control target
= control target key end

     0   :  { %s1222_s0 = inlined_call_operand.hbm [shape: bf16[32,128], index: 0, kind: input, shape index: {}]   ;;  %s1223_s1 = inlined_call_operand.hbm [shape: bf16[128,128], index: 1, kind: input, shape index: {}]   ;;  %s1224_s2 = inlined_call_operand.hbm [shape: f32[32,128], index: 2, kind: input, shape index: {}]   ;;  %s1225_s3 = inlined_call_operand.hbm [shape: bf16[32,128], index: 3, kind: output, shape index: {}]  }
   0x1   :  { %1232 = sst [smem:[#allocation14_spill]] %s1222_s0 }
   0x2   :  { %1233 = sst [smem:[#allocation15_spill]] %s1224_s2 }
   0x3   :  { %8 = vsyncpa [#allocation4], 0 }
   0x4   :  { %10 = vsyncpa [#allocation4 + $0x1], 0 }
   0x5   :  { %11 = vsyncpa [#allocation7], 0 }
   0x6   :  { %12 = vsyncpa [#allocation5], 0 }
   0x7   :  { %14 = vsyncpa [#allocation5 + $0x1], 0  ;;  %s938_s12 = smov 0   ;;  %s940_s13 = smov 0  }
   0x8   :  { %s942_s14 = smov 0   ;;  %s944_s15 = smov 0  }
   0x9   :  { %s946_s16 = smov 0   ;;  %s948_s17 = smov 0  }
   0xa LB: > { %s32_s18 = sadd.s32 1, %s900_s16  ;;  %s41_s19 = sadd.s32 1, %s892_s14  ;;  %s904_s17 = sphi %s948_s17, %s20_s17   ;;  %s900_s16 = sphi %s946_s16, %s1256_s16   ;;  %s896_s15 = sphi %s944_s15, %s1255_s15   ;;  %s892_s14 = sphi %s942_s14, %s1254_s14   ;;  %s888_s13 = sphi %s940_s13, %s1253_s13   ;;  %s884_s12 = sphi %s938_s12, %s1252_s12  }
   0xb   : > { %p34_p0 = scmp.ge.s32.totalorder %s32_s18, 2  ;;  %p48_p1 = scmp.ne.s32.totalorder %s892_s14, %s888_s13 }
   0xc   : > { %p49_p2 = scmp.eq.s32.totalorder %s904_s17, 0  ;;  %p653_p6 = scmp.lt.s32.totalorder %s904_s17, 2 }
   0xd   : > { %s1258_s18 = smov (%p34_p0, %s32_s18), 0  ;;  %s172_s22 = sand.u32 1, %s904_s17  }
   0xe   : > { %p978_p3 = por %p49_p2, %p48_p1  ;;  %s36_s21 = ssub.s32 %s900_s16, %s1258_s18 }
   0xf   : > { %p39_p5 = scmp.eq.s32.totalorder %s36_s21, 0  ;;  %s174_s23 = sand.u32 1, %s892_s14  }
  0x10   : > { %s561_s25 = sshll.u32 %s174_s23, 3  ;;  %s588_s26 = sshll.u32 %s900_s16, 7 }
  0x11   : > { %s989_s24 = scalar_select %p39_p5, %s892_s14, %s41_s19  }
  0x12   : > { %s1235_s0 = sld [smem:[#allocation14_spill]]  ;;  %s176_s30 = scalar_lea.vmem [#allocation3], %s561_s25 }
  0x13   : > { %s184_s4 = sshll.u32 %s176_s30, 4  ;;  %p1001_p7 = pnand %p653_p6, %p978_p3  ;;  %s997_s4 = int_to_ptr.vmem [resolvable:$true] %s184_s4 }
  0x14   : > { %s1005_s6 = sshll.u32 %s174_s23, 4  ;;  %s1007_s7 = scalar_lea.sflag [#allocation4], %s172_s22 }
  0x15   : > { %p728_p9 = pneg %p1001_p7 }
  0x18   : > { %s995_s29 = scalar_lea.hbm %s1235_s0, %s588_s26  ;;  %s731_s11 = scalar_lea.hbm %s1235_s0, 256 }
  0x19   : > { %s726_s8 = scalar_lea.hbm %s995_s29, 128  ;;  %p732_p12 = scmp.lt.u32.totalorder %s995_s29, %s1235_s0 }
  0x1a   : > { %p727_p8 = scmp.ne.s32.totalorder %s995_s29, %s726_s8  ;;  %p733_p13 = scmp.lt.u32.totalorder %s731_s11, %s726_s8 }
  0x1b   : > { %p735_p2 = scmp.lt.u32.totalorder %s726_s8, %s995_s29 }
  0x1c   : > { %p729_p10 = pnand %p728_p9, %p727_p8  ;;  %p734_p0 = por %p733_p13, %p732_p12 }
  0x1e   : > { %p730_p11 = pneg %p729_p10  ;;  %p736_p3 = por %p735_p2, %p734_p0 }
  0x20   : > { %p737_p5 = pnand %p736_p3, %p730_p11 }
  0x22   : > { %740 = shalt.err (!%p737_p5)
}
  0x23   : > { %s741_s21 = scalar_lea.vmem %s997_s4, 128  ;;  %s906_s22 = smov [#allocation3]  }
  0x24   : > { %p742_p6 = scmp.ne.s32.totalorder %s997_s4, %s741_s21  ;;  %s746_s23 = sshll.u32 %s906_s22, 4  ;;  %s747_s23 = int_to_ptr.vmem [resolvable:$false] %s746_s23 }
  0x25   : > { %s748_s25 = scalar_lea.vmem %s747_s23, 256  ;;  %p749_p4 = scmp.lt.s32.totalorder %s997_s4, %s747_s23 }
  0x26   : > { %p744_p8 = pnand %p742_p6, %p728_p9  ;;  %p750_p12 = scmp.lt.s32.totalorder %s748_s25, %s741_s21 }
  0x28   : > { %p745_p10 = pneg %p744_p8  ;;  %p751_p13 = por %p750_p12, %p749_p4 }
  0x2a   : > { %p752_p0 = pnand %p751_p13, %p745_p10 }
  0x2c   : > { %755 = shalt.err (!%p752_p0)
}
  0x2d   : > { %s1228_s26 = smov 64   ;;  %s1231_s27 = smov 4  }
  0x2e   : > { %644 = dma.hbm_to_vmem [thread:$0]  (!%p1001_p7), %s995_s29, 128, %s997_s4, %s1007_s7, %s1228_s26, %s1228_s26, %s1231_s27  }
  0x2f   : > { %s198_s28 = scalar_lea.vmem [#allocation8], %s1005_s6  ;;  %s1040_s8 = sadd.s32 4294967295, %s904_s17  }
  0x30   : > { %s205_s30 = sshll.u32 %s198_s28, 4  ;;  %s557_s9 = sadd.s32 4294967294, %s904_s17   ;;  %s1078_s30 = int_to_ptr.vmem [resolvable:$true] %s205_s30 }
  0x31   : > { %p54_p4 = scmp.ne.s32.totalorder %s888_s13, %s884_s12  ;;  %p1226_p11 = scmp.eq.s32.totalorder %s1040_s8, 0 }
  0x32   : > { %p130_p2 = scmp.eq.s32.totalorder %s1040_s8, 1  ;;  %p136_p3 = scmp.eq.s32.totalorder %s557_s9, 1 }
  0x33   : > { %p1049_p5 = por %p1226_p11, %p54_p4  ;;  %p558_p6 = scmp.ge.s32.totalorder %s904_s17, 1 }
  0x34   : > { %p1057_p8 = por %p130_p2, %p48_p1  ;;  %p1061_p10 = por %p136_p3, %p54_p4 }
  0x35   : > { %s1237_s10 = scalar_select %p1049_p5, 1, 0 }
  0x36   : > { %s1238_s29 = scalar_select %p1057_p8, 1, 0 }
  0x37   : > { %s1239_s4 = scalar_select %p1061_p10, 1, 0 }
  0x38   : > { %p143_p12 = scmp.lt.s32.totalorder %s904_s17, 3  ;;  %s589_s6 = sshll.u32 %s900_s16, 8 }
  0x39   : > { %s909_s19 = smov [#allocation6]   ;;  %s1241_s2 = sld [smem:[#allocation15_spill]] }
  0x3a   : > { %p1067_p13 = pnand %p558_p6, %p143_p12  ;;  %s158_s20 = sshll.u32 %s909_s19, 4  ;;  %s1080_s20 = int_to_ptr.vmem [resolvable:$true] %s158_s20 }
  0x3c   : > { %s1240_s11 = scalar_select %p1067_p13, 1, 0 }
  0x3d   : > { %p637_p1 = pneg %p1067_p13 }
  0x3f   : > { %s1074_s23 = scalar_lea.hbm %s1241_s2, %s589_s6  ;;  %p1084_p0 = pnand %p637_p1, %p1226_p11 }
  0x40   : > { %s756_s28 = scalar_lea.hbm %s1074_s23, 256  ;;  %s761_s19 = scalar_lea.hbm %s1241_s2, 512 }
  0x41   : > { %p757_p4 = scmp.ne.s32.totalorder %s1074_s23, %s756_s28  ;;  %p762_p6 = scmp.lt.u32.totalorder %s1074_s23, %s1241_s2 }
  0x42   : > { %p763_p12 = scmp.lt.u32.totalorder %s761_s19, %s756_s28  ;;  %p765_p1 = scmp.lt.u32.totalorder %s756_s28, %s1074_s23 }
  0x43   : > { %p759_p2 = pnand %p757_p4, %p728_p9 }
  0x44   : > { %p764_p10 = por %p763_p12, %p762_p6 }
  0x45   : > { %p760_p3 = pneg %p759_p2 }
  0x46   : > { %p766_p11 = por %p765_p1, %p764_p10 }
  0x48   : > { %p767_p8 = pnand %p766_p11, %p760_p3 }
  0x4a   : > { %770 = shalt.err (!%p767_p8)
}
  0x4b   : > { %s771_s26 = scalar_lea.vmem %s1078_s30, 256  ;;  %s910_s9 = smov [#allocation8]  }
  0x4c   : > { %p772_p4 = scmp.ne.s32.totalorder %s1078_s30, %s771_s26  ;;  %s776_s6 = sshll.u32 %s910_s9, 4  ;;  %s777_s6 = int_to_ptr.vmem [resolvable:$false] %s776_s6 }
  0x4d   : > { %s778_s21 = scalar_lea.vmem %s777_s6, 512  ;;  %p779_p13 = scmp.lt.s32.totalorder %s1078_s30, %s777_s6 }
  0x4e   : > { %p774_p2 = pnand %p772_p4, %p728_p9  ;;  %p780_p6 = scmp.lt.s32.totalorder %s778_s21, %s771_s26 }
  0x50   : > { %p775_p5 = pneg %p774_p2  ;;  %p781_p12 = por %p780_p6, %p779_p13 }
  0x52   : > { %p782_p10 = pnand %p781_p12, %p775_p5 }
  0x54   : > { %785 = shalt.err (!%p782_p10)
}
  0x55   : > { %s911_s28 = smov 128   ;;  %s912_s19 = smov 8  }
  0x56   : > { %647 = dma.hbm_to_vmem [thread:$0]  (!%p1001_p7), %s1074_s23, 256, %s1078_s30, %s1007_s7, %s911_s28, %s911_s28, %s912_s19  }
  0x57   : > { %s786_s9 = scalar_lea.hbm %s1223_s1, 1024  ;;  %p788_p11 = pneg %p1084_p0 }
  0x58   : > { %p787_p9 = scmp.ne.s32.totalorder %s1223_s1, %s786_s9  ;;  %p793_p13 = scmp.lt.u32.totalorder %s786_s9, %s1223_s1 }
  0x5a   : > { %p789_p5 = pnand %p788_p11, %p787_p9 }
  0x5c   : > { %p790_p8 = pneg %p789_p5 }
  0x5e   : > { %p795_p3 = pnand %p793_p13, %p790_p8 }
  0x60   : > { %798 = shalt.err (!%p795_p3)
}
  0x61   : > { %s799_s5 = scalar_lea.vmem %s1080_s20, 1024  ;;  %p807_p2 = scmp.lt.s32.totalorder %s1080_s20, %s1080_s20 }
  0x62   : > { %p800_p7 = scmp.ne.s32.totalorder %s1080_s20, %s799_s5  ;;  %p808_p6 = scmp.lt.s32.totalorder %s799_s5, %s799_s5 }
  0x64   : > { %p802_p1 = pnand %p800_p7, %p788_p11  ;;  %p809_p12 = por %p808_p6, %p807_p2 }
  0x66   : > { %p803_p4 = pneg %p802_p1 }
  0x68   : > { %p810_p10 = pnand %p809_p12, %p803_p4 }
  0x6a   : > { %813 = shalt.err (!%p810_p10)
}
  0x6b   : > { %s1243_s0 = smov 4   ;;  %s1244_s2 = smov 64  }
  0x6c   : > { %640 = dma.hbm_to_vmem [thread:$0]  (!%p1084_p0), %s1223_s1, 1024, %s1080_s20, [#allocation7], %s1244_s2, %s1244_s2, %s1243_s0  }
  0x6d   : > { %p1245_p9 = scmp.ne.s32.totalorder %s1240_s11, 0 }
  0x6e   : > { %s219_s30 = sand.u32 (!%p1245_p9), 1, %s1040_s8   ;;  %s1140_s23 = sand.u32 (!%p1245_p9), 1, %s888_s13  }
  0x6f   : > { %217 = sbr.rel (%p1245_p9) target bundleno = 554 (0x22a), region = 32  ;;  %s568_s25 = sshll.u32 (!%p1245_p9), %s1140_s23, 3 }
  0x70   : > { %s220_s21 = scalar_lea.sflag (!%p1245_p9), [#allocation4], %s219_s30  ;;  %s1145_s28 = scalar_lea.vmem (!%p1245_p9), [#allocation3], %s568_s25 }
  0x71   : > { %p1246_p11 = scmp.ne.s32.totalorder (!%p1245_p9), %s1237_s10, 0 }
  0x76   : > { %867 = dma.done.wait (%p1246_p11), %s220_s21, 128  }
  0x77   : > { %869 = vsyncadd (%p1246_p11), %s220_s21, 4294967168  ;;  %p1247_p0 = scmp.eq.s32.totalorder %s1040_s8, 0 }
  0x79   : > { %871 = dma.done.wait (%p1247_p0), [#allocation7], 1024   ;;  %p1248_p5 = pmov %p1247_p0 }
  0x7a   : > { %s570_s11 = sshll.u32 %s1140_s23, 4 }
  0x7b   : > { %873 = vsyncadd (%p1248_p5), [#allocation7], 4294966272  ;;  %s1156_s20 = scalar_lea.vmem [#allocation8], %s570_s11 }
  0x7c   : > { %875 = dma.done.wait (%p1246_p11), %s220_s21, 256  }
  0x7d   : > { %877 = vsyncadd (%p1246_p11), %s220_s21, 4294967040  ;;  %v913_v0 = vmov 0.0   ;;  %vm914_vm0 = vmmov 0   ;;  %v713_v1 = vld [vmem:[#allocation6] sm:$0xff]   ;;  %v714_v2 = vld [vmem:[#allocation6 + $0x8] sm:$0xff]   ;;  %s592_s8 = sshll.u32 %s896_s15, 7 }
  0x7e   : > { %607 = vmatprep.subr.bf16.mxu0 %v913_v0  ;;  %623 = vmatprep.mubr.msk.bf16.mxu0 %vm914_vm0, %v913_v0  ;;  %v715_v3 = vld [vmem:[#allocation6 + $0x10] sm:$0xff]   ;;  %v716_v4 = vld [vmem:[#allocation6 + $0x18] sm:$0xff]   ;;  %v717_v5 = vld [vmem:[#allocation6 + $0x20] sm:$0xff]   ;;  %s263_s10 = scalar_lea.vmem [#allocation9], %s568_s25  ;;  %s1171_s26 = scalar_lea.hbm %s1225_s3, %s592_s8 }
  0x7f   : > { %608 = vmatpush3.bf16.msra.mxu0 %v713_v1  ;;  %v718_v6 = vld [vmem:[#allocation6 + $0x28] sm:$0xff]   ;;  %v719_v7 = vld [vmem:[#allocation6 + $0x30] sm:$0xff]   ;;  %v720_v8 = vld [vmem:[#allocation6 + $0x38] sm:$0xff]   ;;  %s441_s19 = sshll.u32 %s263_s10, 4  ;;  %s428_s6 = scalar_lea.sflag [#allocation5], %s1140_s23  ;;  %s1173_s19 = int_to_ptr.vmem [resolvable:$true] %s441_s19 }
  0x80   : > { %609 = vmatprep.subr.bf16.mxu0 %v913_v0  ;;  %v721_v9 = vld [vmem:[%s1145_s28] sm:$0xff]   ;;  %v399_v10 = vld [vmem:[%s1156_s20] sm:$0xff]  ;;  %s814_s5 = scalar_lea.vmem %s1173_s19, 128  ;;  %p1249_p13 = scmp.ne.s32.totalorder %s1238_s29, 0 }
  0x81   : > { %v400_v12 = vld [vmem:[%s1156_s20 + $0x8] sm:$0xff]  ;;  %p815_p8 = scmp.ne.s32.totalorder %s1173_s19, %s814_s5  ;;  %s915_s15 = smov [#allocation9]  }
  0x82   : > { %s818_s0 = sshll.u32 %s915_s15, 4  ;;  %s819_s0 = int_to_ptr.vmem [resolvable:$false] %s818_s0 }
  0x83   : > { %610 = vmatpush3.bf16.msra.mxu0 %v714_v2  ;;  %p816_p3 = pnand %p815_p8, %p1249_p13  ;;  %s820_s2 = scalar_lea.vmem %s819_s0, 256 }
  0x84   : > { %611 = vmatprep.subr.bf16.mxu0 %v913_v0  ;;  %p821_p1 = scmp.lt.s32.totalorder %s1173_s19, %s819_s0  ;;  %p822_p4 = scmp.lt.s32.totalorder %s820_s2, %s814_s5 }
  0x85   : > { %p817_p7 = pneg %p816_p3 }
  0x86   : > { %p823_p2 = por %p822_p4, %p821_p1 }
  0x87   : > { %612 = vmatpush3.bf16.msra.mxu0 %v715_v3 }
  0x88   : > { %613 = vmatprep.subr.bf16.mxu0 %v913_v0  ;;  %p824_p6 = pnand %p823_p2, %p817_p7 }
  0x8b   : > { %614 = vmatpush3.bf16.msra.mxu0 %v716_v4 }
  0x8c   : > { %615 = vmatprep.subr.bf16.mxu0 %v913_v0 }
  0x8f   : > { %616 = vmatpush3.bf16.msra.mxu0 %v717_v5 }
  0x90   : > { %617 = vmatprep.subr.bf16.mxu0 %v913_v0 }
  0x93   : > { %618 = vmatpush3.bf16.msra.mxu0 %v718_v6 }
  0x94   : > { %619 = vmatprep.subr.bf16.mxu0 %v913_v0 }
  0x97   : > { %620 = vmatpush3.bf16.msra.mxu0 %v719_v7 }
  0x98   : > { %621 = vmatprep.subr.bf16.mxu0 %v913_v0 }
  0x9b   : > { %622 = vmatpush3.bf16.msra.mxu0 %v720_v8 }
  0x9e   : > { %624 = vmatmul.mubr.bf16.vlgmr.msra.gmra.mrb[0].mxu0 %v721_v9 }
 0x171   : > { %v383_v11 = vpop.f32.mrb[0].mxu0 }
 0x172   : > { %v401_v13 = vadd.f32 %v399_v10, %v383_v11  ;;  %v625_v14 = vpop.f32.mrb[1].mxu0 }
 0x173   : > { %v386_v15 = vpop.f32.mrb[2].mxu0 }
 0x174   : > { %v402_v16 = vadd.f32 %v400_v12, %v386_v15  ;;  %v626_v17 = vpop.f32.mrb[3].mxu0  ;;  %v403_v18 = vmul.f32 %v401_v13, %v401_v13 }
 0x176   : > { %405 = vadd.xlane.f32.xlu0 %v403_v18  ;;  %v404_v19 = vmul.f32 %v402_v16, %v402_v16 }
 0x17a   : > { %407 = vadd.xlane.f32.xlu0 %v404_v19 }
 0x203   : > { %v406_v20 = vpop.xlane.xlu0 %405 }
 0x204   : > { %v409_v21 = vmax.f32 %v406_v20, 1e-24 }
 0x206   : > { %722 = vrsqrt.f32 %v409_v21 }
 0x207   : > { %v408_v22 = vpop.xlane.xlu0 %407 }
 0x208   : > { %v410_v23 = vmax.f32 %v408_v22, 1e-24 }
 0x20a   : > { %724 = vrsqrt.f32 %v410_v23 }
 0x210   : > { %v723_v24 = vpop.eup %722 }
 0x211   : > { %v413_v25 = vmul.f32 %v723_v24, %v401_v13 }
 0x213   : > { %v415_v28 = vmax.f32 %v413_v25, 0.0 }
 0x214   : > { %v725_v26 = vpop.eup %724 }
 0x215   : > { %v414_v27 = vmul.f32 %v725_v26, %v402_v16 }
 0x217   : > { %v416_v29 = vmax.f32 %v414_v27, 0.0 }
 0x219   : > { %v596_v30 = vpack.c.bf16 %v416_v29, %v415_v28 }
 0x21b   : > { %597 = vst [vmem:[%s263_s10] sm:$0xff] %v596_v30  }
 0x21c   : > { %827 = shalt.err (!%p824_p6)
}
 0x21d   : > { %s828_s7 = scalar_lea.hbm %s1171_s26, 128  ;;  %s832_s25 = scalar_lea.hbm %s1225_s3, 256 }
 0x21e   : > { %p829_p12 = scmp.ne.s32.totalorder %s1171_s26, %s828_s7  ;;  %p833_p11 = scmp.lt.u32.totalorder %s1171_s26, %s1225_s3 }
 0x21f   : > { %p834_p0 = scmp.lt.u32.totalorder %s832_s25, %s828_s7  ;;  %p836_p8 = scmp.lt.u32.totalorder %s828_s7, %s1171_s26 }
 0x220   : > { %p830_p10 = pnand %p829_p12, %p1249_p13 }
 0x221   : > { %p835_p5 = por %p834_p0, %p833_p11 }
 0x222   : > { %p831_p9 = pneg %p830_p10 }
 0x223   : > { %p837_p3 = por %p836_p8, %p835_p5 }
 0x225   : > { %p838_p7 = pnand %p837_p3, %p831_p9 }
 0x227   : > { %841 = shalt.err (!%p838_p7)
}
 0x228   : > { %s916_s11 = smov 64   ;;  %s917_s20 = smov 4  }
 0x229   : > { %635 = dma.vmem_to_hbm [thread:$0]  (%p1249_p13), %s1173_s19, 128, %s1171_s26, %s428_s6, %s916_s11, %s916_s11, %s917_s20  }
 0x22a PF: > { %s456_s8 = sand.u32 1, %s884_s12   ;;  %p1250_p1 = scmp.ne.s32.totalorder %s1239_s4, 0 }
 0x22b   : > { %p1251_p4 = scmp.ge.s32.totalorder %s904_s17, 2  ;;  %s457_s10 = scalar_lea.sflag [#allocation5], %s456_s8 }
 0x22d   : > { %p649_p2 = pnand %p1251_p4, %p1250_p1 }
 0x22f   : > { %879 = dma.done.wait (!%p649_p2), %s457_s10, 128  }
 0x230   : > { %881 = vsyncadd (!%p649_p2), %s457_s10, 4294967168  ;;  %s20_s17 = sadd.s32 1, %s904_s17   ;;  %s1252_s12 = smov %s888_s13 }
 0x231   : > { %p17_p6 = scmp.ge.s32.totalorder %s20_s17, 4   ;;  %s1253_s13 = smov %s892_s14 }
 0x232   : > { %s1254_s14 = smov %s989_s24  ;;  %s1255_s15 = smov %s900_s16 }
 0x233   : > { %s1256_s16 = smov %s1258_s18  ;;  %19 = sbr.rel (!%p17_p6) target bundleno = 10 (0xa), region = 101 }
 0x23a   :  { %462 = vsyncpa [#allocation4], 1 }
 0x23b   :  { %464 = vsyncpa [#allocation4 + $0x1], 1 }
 0x23c   :  { %465 = vsyncpa [#allocation7], 1 }
 0x23d   :  { %466 = vsyncpa [#allocation5], 1 }
 0x23e   :  { %468 = vsyncpa [#allocation5 + $0x1], 1 }

</bundles_post_ra>
